<compile_context>
chip_gen: v5e
topology: v5e:2x2
jax: 0.10.0
libtpu: 0.0.40
codegen_flags: <defaults>
</compile_context>

<pallas_src>
import jax
import jax.numpy as jnp
from jax.experimental import pallas as pl
from jax.experimental.pallas import tpu as pltpu


# ----------------------------------------------------------------------------- helpers
def _round_up(x, m):
    return ((x + m - 1) // m) * m


# ----------------------------------------------------------------------------- kernel
def _fused_decoder_kernel(x_ref, w1_ref, b1_ref, w2_ref, b2_ref, w3_ref, b3_ref, o_ref):
    # x: (TM, 128) bf16; w1: (128, 256); w2: (256, 512); w3: (512, 128) (bf16, block-diag).
    # Biases are f32; every dot accumulates in f32 on the MXU.
    y = jnp.dot(x_ref[...], w1_ref[...], preferred_element_type=jnp.float32)
    y = jnp.maximum(y + b1_ref[...], 0.0).astype(w2_ref.dtype)   # layer-1 ReLU
    y = jnp.dot(y, w2_ref[...], preferred_element_type=jnp.float32)
    y = jnp.maximum(y + b2_ref[...], 0.0).astype(w3_ref.dtype)   # layer-2 ReLU
    y = jnp.dot(y, w3_ref[...], preferred_element_type=jnp.float32)
    o_ref[...] = jnp.maximum(y + b3_ref[...], 0.0).astype(o_ref.dtype)  # layer-3 ReLU


def _fused_decoder_call(xp, packed, tm):
    """xp: (M2, 128) rows = pairs of latent pixels (bf16). Returns (M2, 128) f32."""
    M2, cin2 = xp.shape
    assert cin2 == 128 and M2 % tm == 0

    flops = 2 * M2 * (128 * 256 + 256 * 512 + 512 * 128)
    bytes_accessed = int(
        xp.size * xp.dtype.itemsize
        + sum(int(v.size) * v.dtype.itemsize for v in packed.values())
        + M2 * 128 * 4
    )

    # VMEM: double-buffered x/out tiles + (effectively resident) weights + live intermediates.
    weight_bytes = sum(int(v.size) * v.dtype.itemsize for v in packed.values())
    tile_bytes = tm * 128 * (xp.dtype.itemsize + 4)         # one in + one out buffer
    inter_bytes = tm * (256 + 512) * (4 + 2)                # f32 accum + bf16 recast temporaries
    vmem_limit = int(min(48 << 20,
                         2 * (weight_bytes + tile_bytes) + inter_bytes + (2 << 20)))

    return pl.pallas_call(
        _fused_decoder_kernel,
        out_shape=jax.ShapeDtypeStruct((M2, 128), jnp.float32),
        grid=(M2 // tm,),
        in_specs=[
            pl.BlockSpec((tm, 128), lambda i: (i, 0)),     # x tile (streamed)
            pl.BlockSpec((128, 256), lambda i: (0, 0)),    # weights/biases: constant index_map
            pl.BlockSpec((1, 256), lambda i: (0, 0)),      #   -> fetched once, reused each step
            pl.BlockSpec((256, 512), lambda i: (0, 0)),
            pl.BlockSpec((1, 512), lambda i: (0, 0)),
            pl.BlockSpec((512, 128), lambda i: (0, 0)),
            pl.BlockSpec((1, 128), lambda i: (0, 0)),
        ],
        out_specs=pl.BlockSpec((tm, 128), lambda i: (i, 0)),
        compiler_params=pltpu.CompilerParams(
            dimension_semantics=("parallel",),             # row blocks are independent
            vmem_limit_bytes=vmem_limit,
        ),
        cost_estimate=pl.CostEstimate(
            flops=flops, transcendentals=0, bytes_accessed=bytes_accessed
        ),
    )(xp, packed["w1p"], packed["b1p"], packed["w2p"], packed["b2p"],
      packed["w3p"], packed["b3p"])


# ------------------------------------------------------------------------ params / pack
def init_decoder_params(key):
    """PyTorch-layout ConvTranspose2d params.

    PyTorch default init: U(-1/sqrt(fan_in), 1/sqrt(fan_in)) with
    fan_in = weight.size(1)*kH*kW = out_channels*2*2 for ConvTranspose2d.
    """
    specs = [(64, 32), (32, 16), (16, 1)]
    params = {}
    for idx, (cin, cout) in enumerate(specs, start=1):
        key, kw, kb = jax.random.split(key, 3)
        bound = 1.0 / float(jnp.sqrt(cout * 2 * 2))
        params[f"w{idx}"] = jax.random.uniform(
            kw, (cin, cout, 2, 2), jnp.float32, minval=-bound, maxval=bound
        )
        params[f"b{idx}"] = jax.random.uniform(
            kb, (cout,), jnp.float32, minval=-bound, maxval=bound
        )
    return params


def pack_decoder_params(params, compute_dtype=jnp.bfloat16):
    """One-time repack (hoisted out of the forward path).

    Per-pixel column structure: layer k maps (..., c_in) -> (..., ki, kj, c_out),
    channels fastest; layers 2/3 become block-diagonal.  The final raster-order
    column permutation is folded into w3/b3 here, and every matrix gets a
    kron(eye(2), .) so two latent pixels share one 128-lane row.
    """
    def pack_w(w):  # (Cin, Cout, 2, 2) -> (Cin, 4*Cout), cols = (ki, kj, co), co fastest
        cin, cout = w.shape[0], w.shape[1]
        return jnp.transpose(w, (0, 2, 3, 1)).reshape(cin, 4 * cout)

    w1pp = pack_w(params["w1"])                                            # (64, 128)
    w2pp = jnp.kron(jnp.eye(4, dtype=jnp.float32), pack_w(params["w2"]))   # (128, 256)
    w3pp = jnp.kron(jnp.eye(16, dtype=jnp.float32), pack_w(params["w3"]))  # (256, 64)

    # Fold (ki1,kj1,ki2,kj2,ki3,kj3) -> raster (ki1,ki2,ki3,kj1,kj2,kj3) into w3:
    # output row within the 8x8 block = 4*ki1+2*ki2+ki3, col = 4*kj1+2*kj2+kj3.
    w3pp = (w3pp.reshape(256, 2, 2, 2, 2, 2, 2)
                 .transpose(0, 1, 3, 5, 2, 4, 6)
                 .reshape(256, 64))

    b1pp = jnp.tile(params["b1"], 4)     # (128,)
    b2pp = jnp.tile(params["b2"], 16)    # (256,)
    b3pp = jnp.tile(params["b3"], 64)    # (64,)  cout==1 -> constant, permutation is a no-op

    eye2 = jnp.eye(2, dtype=jnp.float32)
    def pair(w):  # pack two latent pixels per row
        return jnp.kron(eye2, w)

    return {
        "w1p": pair(w1pp).astype(compute_dtype),                  # (128, 256)
        "w2p": pair(w2pp).astype(compute_dtype),                  # (256, 512)
        "w3p": pair(w3pp).astype(compute_dtype),                  # (512, 128)
        "b1p": jnp.tile(b1pp, 2).reshape(1, 256).astype(jnp.float32),
        "b2p": jnp.tile(b2pp, 2).reshape(1, 512).astype(jnp.float32),
        "b3p": jnp.tile(b3pp, 2).reshape(1, 128).astype(jnp.float32),
    }


# -------------------------------------------------------------------------------- forward
def decoder_forward_nhwc(packed, z_nhwc, tm=512):
    """Hot path: channels-last latent (N, H, W, 64) -> (N, 1, 8H, 8W).

    No input transpose; one fused pallas_call; one cheap block transpose at the end.
    """
    N, H, W, cin = z_nhwc.shape
    assert cin == 64
    M = N * H * W

    # Pair two latent pixels per 128-lane row; pad rows to the tile size.
    M2 = pl.cdiv(M, 2)
    tm_eff = min(tm, _round_up(M2, 16))
    M2p = _round_up(M2, tm_eff)

    x2d = z_nhwc.reshape(M, 64).astype(jnp.bfloat16)
    pad_rows = 2 * M2p - M
    if pad_rows:
        x2d = jnp.pad(x2d, ((0, pad_rows), (0, 0)))
    xp = x2d.reshape(M2p, 128)

    out2d = _fused_decoder_call(xp, packed, tm_eff)        # (M2p, 128) f32, raster cols

    # Each latent pixel owns a raster-ordered 8x8 block: single cheap block transpose.
    out = out2d.reshape(2 * M2p, 64)[:M].reshape(N, H, W, 8, 8)
    out = jnp.transpose(out, (0, 1, 3, 2, 4))              # (N, H, 8, W, 8)
    return out.reshape(N, 1, 8 * H, 8 * W)


def decoder_forward(packed, z_nchw, tm=512):
    """NCHW compatibility entry matching Decoder.forward(z) semantics."""
    return decoder_forward_nhwc(packed, jnp.transpose(z_nchw, (0, 2, 3, 1)), tm=tm)


decoder_forward_jit = jax.jit(decoder_forward_nhwc)


# ----------------------------------------------------------------------- pure-JAX reference
def _reference_decoder(params, z):
    def deconv_relu(x, w, b):
        # out[n, o, 2h+k, 2w+l] = sum_c x[n,c,h,w] * w[c,o,k,l] + b[o]
        y = jnp.einsum("nchw,cokl->nohkwl", x, w, precision=jax.lax.Precision.HIGHEST)
        n, cout, h, _, wd, _ = y.shape
        y = y.reshape(n, cout, 2 * h, 2 * wd) + b[None, :, None, None]
        return jax.nn.relu(y)

    x = deconv_relu(z, params["w1"], params["b1"])
    x = deconv_relu(x, params["w2"], params["b2"])
    x = deconv_relu(x, params["w3"], params["b3"])
    return x


# ------------------------------------------------------------------------------------ main
if __name__ == "__main__":
    key = jax.random.PRNGKey(0)
    pkey, zkey = jax.random.split(key)

    params = init_decoder_params(pkey)
    packed = pack_decoder_params(params)   # one-time repack (bf16 operands, f32 biases)

    # Latent input: batch=2, channels=64 (deconv1 in_channels), spatial 4x4,
    # kept channels-last so the hot path has no NCHW->NHWC transpose.
    N, H, W = 2, 4, 4
    z_nhwc = jax.random.normal(zkey, (N, H, W, 64), dtype=jnp.float32)

    out = decoder_forward_jit(packed, z_nhwc)
    out = jax.block_until_ready(out)

    assert out.shape == (N, 1, 8 * H, 8 * W), out.shape
    assert bool(jnp.all(out >= 0.0))  # ReLU output

    # Correctness vs an independent f32 pure-JAX reference.  Tolerance covers bf16
    # matmul operands with f32 accumulation (packing bugs would be O(0.1+)).
    z_nchw = jnp.transpose(z_nhwc, (0, 3, 1, 2))
    ref = _reference_decoder(params, z_nchw)
    max_err = float(jnp.max(jnp.abs(out - ref)))
    assert max_err < 3e-2, f"max abs err vs reference: {max_err}"

    print("KERNEL_OK")
</pallas_src>

<mosaic_0001>
module attributes {stable_mosaic.version = 11 : i64} {
  func.func @_fused_decoder_kernel(%arg0: i32, %arg1: memref<16x128xbf16, #tpu.memory_space<vmem>>, %arg2: memref<128x256xbf16, #tpu.memory_space<vmem>>, %arg3: memref<1x256xf32, #tpu.memory_space<vmem>>, %arg4: memref<256x512xbf16, #tpu.memory_space<vmem>>, %arg5: memref<1x512xf32, #tpu.memory_space<vmem>>, %arg6: memref<512x128xbf16, #tpu.memory_space<vmem>>, %arg7: memref<1x128xf32, #tpu.memory_space<vmem>>, %arg8: memref<16x128xf32, #tpu.memory_space<vmem>>) attributes {dimension_semantics = [#tpu.dimension_semantics<parallel>], iteration_bounds = array<i64: 1>, scalar_prefetch = 0 : i64, scratch_operands = 0 : i64, tpu.core_type = #tpu.core_type<tc>, window_params = [{transform_indices = @transform_0, window_bounds = array<i64: 16, 128>}, {pipeline_mode = #tpu.pipeline_mode<synchronous>, transform_indices = @transform_1, window_bounds = array<i64: 128, 256>}, {pipeline_mode = #tpu.pipeline_mode<synchronous>, transform_indices = @transform_2, window_bounds = array<i64: 1, 256>}, {pipeline_mode = #tpu.pipeline_mode<synchronous>, transform_indices = @transform_3, window_bounds = array<i64: 256, 512>}, {pipeline_mode = #tpu.pipeline_mode<synchronous>, transform_indices = @transform_4, window_bounds = array<i64: 1, 512>}, {pipeline_mode = #tpu.pipeline_mode<synchronous>, transform_indices = @transform_5, window_bounds = array<i64: 512, 128>}, {pipeline_mode = #tpu.pipeline_mode<synchronous>, transform_indices = @transform_6, window_bounds = array<i64: 1, 128>}, {transform_indices = @transform_7, window_bounds = array<i64: 16, 128>}]} {
    %c0 = arith.constant 0 : index
    %c0_0 = arith.constant 0 : index
    %0 = vector.load %arg1[%c0, %c0_0] : memref<16x128xbf16, #tpu.memory_space<vmem>>, vector<16x128xbf16>
    %c0_1 = arith.constant 0 : index
    %c0_2 = arith.constant 0 : index
    %1 = vector.load %arg2[%c0_1, %c0_2] : memref<128x256xbf16, #tpu.memory_space<vmem>>, vector<128x256xbf16>
    %cst = arith.constant dense<0.000000e+00> : vector<16x256xf32>
    %2 = tpu.matmul %0, %1, %cst {dimension_numbers = #tpu.dot_dimension_numbers<[1], [0], [0], [1], [0, 0, 1, 1], [], []>} : vector<16x128xbf16>, vector<128x256xbf16>, vector<16x256xf32> -> vector<16x256xf32>
    %c0_3 = arith.constant 0 : index
    %c0_4 = arith.constant 0 : index
    %3 = vector.load %arg3[%c0_3, %c0_4] : memref<1x256xf32, #tpu.memory_space<vmem>>, vector<1x256xf32>
    %4 = vector.broadcast %3 : vector<1x256xf32> to vector<16x256xf32>
    %5 = arith.addf %2, %4 : vector<16x256xf32>
    %cst_5 = arith.constant 0.000000e+00 : f32
    %6 = vector.broadcast %cst_5 : f32 to vector<16x256xf32>
    %7 = arith.maximumf %5, %6 : vector<16x256xf32>
    %8 = arith.truncf %7 : vector<16x256xf32> to vector<16x256xbf16>
    %c0_6 = arith.constant 0 : index
    %c0_7 = arith.constant 0 : index
    %9 = vector.load %arg4[%c0_6, %c0_7] : memref<256x512xbf16, #tpu.memory_space<vmem>>, vector<256x512xbf16>
    %cst_8 = arith.constant dense<0.000000e+00> : vector<16x512xf32>
    %10 = tpu.matmul %8, %9, %cst_8 {dimension_numbers = #tpu.dot_dimension_numbers<[1], [0], [0], [1], [0, 0, 1, 1], [], []>} : vector<16x256xbf16>, vector<256x512xbf16>, vector<16x512xf32> -> vector<16x512xf32>
    %c0_9 = arith.constant 0 : index
    %c0_10 = arith.constant 0 : index
    %11 = vector.load %arg5[%c0_9, %c0_10] : memref<1x512xf32, #tpu.memory_space<vmem>>, vector<1x512xf32>
    %12 = vector.broadcast %11 : vector<1x512xf32> to vector<16x512xf32>
    %13 = arith.addf %10, %12 : vector<16x512xf32>
    %cst_11 = arith.constant 0.000000e+00 : f32
    %14 = vector.broadcast %cst_11 : f32 to vector<16x512xf32>
    %15 = arith.maximumf %13, %14 : vector<16x512xf32>
    %16 = arith.truncf %15 : vector<16x512xf32> to vector<16x512xbf16>
    %c0_12 = arith.constant 0 : index
    %c0_13 = arith.constant 0 : index
    %17 = vector.load %arg6[%c0_12, %c0_13] : memref<512x128xbf16, #tpu.memory_space<vmem>>, vector<512x128xbf16>
    %cst_14 = arith.constant dense<0.000000e+00> : vector<16x128xf32>
    %18 = tpu.matmul %16, %17, %cst_14 {dimension_numbers = #tpu.dot_dimension_numbers<[1], [0], [0], [1], [0, 0, 1, 1], [], []>} : vector<16x512xbf16>, vector<512x128xbf16>, vector<16x128xf32> -> vector<16x128xf32>
    %c0_15 = arith.constant 0 : index
    %c0_16 = arith.constant 0 : index
    %19 = vector.load %arg7[%c0_15, %c0_16] : memref<1x128xf32, #tpu.memory_space<vmem>>, vector<1x128xf32>
    %20 = vector.broadcast %19 : vector<1x128xf32> to vector<16x128xf32>
    %21 = arith.addf %18, %20 : vector<16x128xf32>
    %cst_17 = arith.constant 0.000000e+00 : f32
    %22 = vector.broadcast %cst_17 : f32 to vector<16x128xf32>
    %23 = arith.maximumf %21, %22 : vector<16x128xf32>
    %c0_18 = arith.constant 0 : index
    %c0_19 = arith.constant 0 : index
    %24 = vector.load %arg8[%c0_18, %c0_19] : memref<16x128xf32, #tpu.memory_space<vmem>>, vector<16x128xf32>
    tpu.vector_store %arg8[%c0_18, %c0_19], %23 {strides = array<i32>} : memref<16x128xf32, #tpu.memory_space<vmem>>, vector<16x128xf32>,
    return
  }
  func.func @transform_0(%arg0: i32) -> (i32, i32) {
    %c0_i32 = arith.constant 0 : i32
    %c0_i32_0 = arith.constant 0 : i32
    return %arg0, %c0_i32 : i32, i32
  }
  func.func @transform_1(%arg0: i32) -> (i32, i32) {
    %c0_i32 = arith.constant 0 : i32
    %c0_i32_0 = arith.constant 0 : i32
    %c0_i32_1 = arith.constant 0 : i32
    return %c0_i32, %c0_i32_0 : i32, i32
  }
  func.func @transform_2(%arg0: i32) -> (i32, i32) {
    %c0_i32 = arith.constant 0 : i32
    %c0_i32_0 = arith.constant 0 : i32
    %c0_i32_1 = arith.constant 0 : i32
    return %c0_i32, %c0_i32_0 : i32, i32
  }
  func.func @transform_3(%arg0: i32) -> (i32, i32) {
    %c0_i32 = arith.constant 0 : i32
    %c0_i32_0 = arith.constant 0 : i32
    %c0_i32_1 = arith.constant 0 : i32
    return %c0_i32, %c0_i32_0 : i32, i32
  }
  func.func @transform_4(%arg0: i32) -> (i32, i32) {
    %c0_i32 = arith.constant 0 : i32
    %c0_i32_0 = arith.constant 0 : i32
    %c0_i32_1 = arith.constant 0 : i32
    return %c0_i32, %c0_i32_0 : i32, i32
  }
  func.func @transform_5(%arg0: i32) -> (i32, i32) {
    %c0_i32 = arith.constant 0 : i32
    %c0_i32_0 = arith.constant 0 : i32
    %c0_i32_1 = arith.constant 0 : i32
    return %c0_i32, %c0_i32_0 : i32, i32
  }
  func.func @transform_6(%arg0: i32) -> (i32, i32) {
    %c0_i32 = arith.constant 0 : i32
    %c0_i32_0 = arith.constant 0 : i32
    %c0_i32_1 = arith.constant 0 : i32
    return %c0_i32, %c0_i32_0 : i32, i32
  }
  func.func @transform_7(%arg0: i32) -> (i32, i32) {
    %c0_i32 = arith.constant 0 : i32
    %c0_i32_0 = arith.constant 0 : i32
    return %arg0, %c0_i32 : i32, i32
  }
}

</mosaic_0001>

<bundles_post_ra>
// kernel: decoder_forward_nhwc.1
= control target key start
LH: loop header
LB: loop body
LE: loop exit
PB: predicated region body
PF: predicated region fallthrough
CT: control target
= control target key end

     0   :  { %12 = vsyncpa [#allocation3], 0  ;;  %s1788_s0 = inlined_call_operand.vmem [shape: bf16[16,128], index: 0, kind: input, shape index: {}]   ;;  %s1789_s1 = inlined_call_operand.hbm [shape: bf16[128,256], index: 1, kind: input, shape index: {}]   ;;  %s1790_s2 = inlined_call_operand.vmem [shape: f32[1,256], index: 2, kind: input, shape index: {}]   ;;  %s1791_s3 = inlined_call_operand.hbm [shape: bf16[256,512], index: 3, kind: input, shape index: {}]   ;;  %s1792_s4 = inlined_call_operand.vmem [shape: f32[1,512], index: 4, kind: input, shape index: {}]   ;;  %s1793_s5 = inlined_call_operand.hbm [shape: bf16[512,128], index: 5, kind: input, shape index: {}]   ;;  %s1794_s6 = inlined_call_operand.vmem [shape: f32[1,128], index: 6, kind: input, shape index: {}]   ;;  %s1795_s7 = inlined_call_operand.vmem [shape: f32[16,128], index: 7, kind: output, shape index: {}]  }
   0x1   :  { %13 = vsyncpa [#allocation5], 0  ;;  %s35_s26 = sshll.u32 %s1791_s3, 4  ;;  %s1712_s27 = smov [#allocation4]   ;;  %s36_s26 = int_to_ptr.hbm [resolvable:$true] %s35_s26 }
   0x2   :  { %s37_s28 = sshll.u32 %s1712_s27, 4  ;;  %s20_s8 = sshll.u32 %s1789_s1, 4  ;;  %s38_s28 = int_to_ptr.vmem [resolvable:$true] %s37_s28  ;;  %s21_s8 = int_to_ptr.hbm [resolvable:$true] %s20_s8 }
   0x3   :  { %s1713_s9 = smov 256   ;;  %s1714_s10 = smov 16  }
   0x4   :  { %43 = dma.hbm_to_vmem [thread:$0]  %s36_s26, 8192, %s38_s28, [#allocation5], %s1713_s9, %s1713_s9, %s1714_s10  }
   0x5   :  { %s1715_s11 = smov [#allocation2]   ;;  %s1716_s13 = smov 128  }
   0x6   :  { %s22_s12 = sshll.u32 %s1715_s11, 4  ;;  %s1717_s14 = smov 8   ;;  %s23_s12 = int_to_ptr.vmem [resolvable:$true] %s22_s12 }
   0x7   :  { %28 = dma.hbm_to_vmem [thread:$0]  %s21_s8, 2048, %s23_s12, [#allocation3], %s1716_s13, %s1716_s13, %s1717_s14  }
   0x8   :  { %s50_s16 = sshll.u32 %s1793_s5, 4  ;;  %s1718_s17 = smov [#allocation6]   ;;  %s51_s16 = int_to_ptr.hbm [resolvable:$true] %s50_s16 }
   0x9   :  { %s52_s18 = sshll.u32 %s1718_s17, 4  ;;  %s1719_s19 = smov 64   ;;  %s53_s18 = int_to_ptr.vmem [resolvable:$true] %s52_s18 }
   0xa   :  { %s1720_s1 = smov 4  }
   0xb   :  { %58 = dma.hbm_to_vmem [thread:$0]  %s51_s16, 4096, %s53_s18, [#allocation5], %s1719_s19, %s1719_s19, %s1720_s1  }
   0xc   :  { %1708 = dma.done.wait [#allocation3], 2048  }
   0xd   :  { %1709 = vsyncadd [#allocation3], 4294965248 }
   0xe   :  { %1710 = dma.done.wait [#allocation5], 12288  }
   0xf   :  { %1711 = vsyncadd [#allocation5], 4294955008  ;;  %v1123_v0 = vld [vmem:[#allocation2 + $0x70] sm:$0xf]  ;;  %v1529_v1 = vld [vmem:[#allocation2 + $0x74] sm:$0xf0] }
  0x10   :  { %v1528_v2 = vld [vmem:[#allocation2 + $0x74] sm:$0xf]  ;;  %v1124_v3 = vor.u32 %v1529_v1, %v1123_v0  ;;  %v1125_v4 = vld [vmem:[#allocation2 + $0x78] sm:$0xf0]  ;;  %v1115_v5 = vld [vmem:[#allocation2 + $0x60] sm:$0xf] }
  0x11   :  { %v1527_v6 = vld [vmem:[#allocation2 + $0x64] sm:$0xf0]  ;;  %v1128_v7 = vor.u32 %v1528_v2, %v1125_v4  ;;  %v1526_v8 = vld [vmem:[#allocation2 + $0x64] sm:$0xf]  ;;  %v1117_v9 = vld [vmem:[#allocation2 + $0x68] sm:$0xf0] }
  0x12   :  { %183 = vmatpush.bf16.msra.mxu0 %v1124_v3  ;;  %v1116_v10 = vor.u32 %v1527_v6, %v1115_v5  ;;  %v1120_v11 = vor.u32 %v1526_v8, %v1117_v9  ;;  %v1107_v12 = vld [vmem:[#allocation2 + $0x50] sm:$0xf]  ;;  %v1525_v13 = vld [vmem:[#allocation2 + $0x54] sm:$0xf0]  ;;  %v1524_v14 = vld [vmem:[#allocation2 + $0x54] sm:$0xf] }
  0x13   :  { %197 = vmatpush.bf16.msra.mxu1 %v1128_v7  ;;  %v1109_v15 = vld [vmem:[#allocation2 + $0x58] sm:$0xf0]  ;;  %v1108_v16 = vor.u32 %v1525_v13, %v1107_v12  ;;  %v1099_v18 = vld [vmem:[#allocation2 + $0x40] sm:$0xf]  ;;  %v1523_v19 = vld [vmem:[#allocation2 + $0x44] sm:$0xf0] }
  0x14   :  { %v1112_v17 = vor.u32 %v1524_v14, %v1109_v15  ;;  %v1522_v20 = vld [vmem:[#allocation2 + $0x44] sm:$0xf]  ;;  %v1101_v21 = vld [vmem:[#allocation2 + $0x48] sm:$0xf0]  ;;  %v1100_v22 = vor.u32 %v1523_v19, %v1099_v18  ;;  %v1243_v23 = vld [vmem:[#allocation4 + $0xe0] sm:$0xf] }
  0x15   :  { %v1560_v24 = vld [vmem:[#allocation4 + $0xec] sm:$0xf0]  ;;  %v1371_v25 = vld [vmem:[#allocation4 + $0x1e0] sm:$0xf]  ;;  %v1104_v26 = vor.u32 %v1522_v20, %v1101_v21  ;;  %v1521_v28 = vld [vmem:[#allocation2 + $0x34] sm:$0xf0] }
  0x16   :  { %184 = vmatpush.bf16.msra.mxu0 %v1116_v10  ;;  %v1091_v27 = vld [vmem:[#allocation2 + $0x30] sm:$0xf]  ;;  %v1244_v29 = vor.u32 %v1560_v24, %v1243_v23  ;;  %v1520_v31 = vld [vmem:[#allocation2 + $0x34] sm:$0xf]  ;;  %v1093_v32 = vld [vmem:[#allocation2 + $0x38] sm:$0xf0] }
  0x17   :  { %198 = vmatpush.bf16.msra.mxu1 %v1120_v11  ;;  %v1592_v30 = vld [vmem:[#allocation4 + $0x1ec] sm:$0xf0]  ;;  %v1227_v34 = vld [vmem:[#allocation4 + $0xc0] sm:$0xf]  ;;  %v1092_v38 = vor.u32 %v1521_v28, %v1091_v27  ;;  %v1519_v40 = vld [vmem:[#allocation2 + $0x24] sm:$0xf0]  ;;  %v1096_v43 = vor.u32 %v1520_v31, %v1093_v32 }
  0x18   :  { %v1372_v33 = vor.u32 %v1592_v30, %v1371_v25  ;;  %611 = vmatpush.bf16.msra.mxu2 %v1244_v29  ;;  %v1556_v35 = vld [vmem:[#allocation4 + $0xcc] sm:$0xf0]  ;;  %v1355_v36 = vld [vmem:[#allocation4 + $0x1c0] sm:$0xf]  ;;  %v1518_v44 = vld [vmem:[#allocation2 + $0x24] sm:$0xf] }
  0x19   :  { %v1588_v37 = vld [vmem:[#allocation4 + $0x1cc] sm:$0xf0]  ;;  %v1083_v39 = vld [vmem:[#allocation2 + $0x20] sm:$0xf]  ;;  %v1228_v41 = vor.u32 %v1556_v35, %v1227_v34  ;;  %v1085_v47 = vld [vmem:[#allocation2 + $0x28] sm:$0xf0] }
  0x1a   :  { %185 = vmatpush.bf16.msra.mxu0 %v1108_v16  ;;  %625 = vmatpush.bf16.msra.mxu3 %v1372_v33  ;;  %v1356_v42 = vor.u32 %v1588_v37, %v1355_v36  ;;  %v1211_v45 = vld [vmem:[#allocation4 + $0xa0] sm:$0xf]  ;;  %v1552_v46 = vld [vmem:[#allocation4 + $0xac] sm:$0xf0]  ;;  %v1084_v51 = vor.u32 %v1519_v40, %v1083_v39  ;;  %v1088_v56 = vor.u32 %v1518_v44, %v1085_v47  ;;  %v1517_v57 = vld [vmem:[#allocation2 + $0x14] sm:$0xf0] }
  0x1b   :  { %199 = vmatpush.bf16.msra.mxu1 %v1112_v17  ;;  %v1339_v48 = vld [vmem:[#allocation4 + $0x1a0] sm:$0xf]  ;;  %v1584_v49 = vld [vmem:[#allocation4 + $0x1ac] sm:$0xf0]  ;;  %v1212_v50 = vor.u32 %v1552_v46, %v1211_v45  ;;  %v1516_v60 = vld [vmem:[#allocation2 + $0x14] sm:$0xf] }
  0x1c   :  { %612 = vmatpush.bf16.msra.mxu2 %v1228_v41  ;;  %v1075_v52 = vld [vmem:[#allocation2 + $0x10] sm:$0xf]  ;;  %v1340_v53 = vor.u32 %v1584_v49, %v1339_v48  ;;  %v1195_v54 = vld [vmem:[#allocation4 + $0x80] sm:$0xf]  ;;  %v1077_v61 = vld [vmem:[#allocation2 + $0x18] sm:$0xf0] }
  0x1d   :  { %v1548_v55 = vld [vmem:[#allocation4 + $0x8c] sm:$0xf0]  ;;  %v1323_v58 = vld [vmem:[#allocation4 + $0x180] sm:$0xf]  ;;  %v1076_v0 = vor.u32 %v1517_v57, %v1075_v52  ;;  %v1515_v1 = vld [vmem:[#allocation2 + $0x4] sm:$0xf0]  ;;  %v1080_v5 = vor.u32 %v1516_v60, %v1077_v61 }
  0x1e   :  { %186 = vmatpush.bf16.msra.mxu0 %v1100_v22  ;;  %626 = vmatpush.bf16.msra.mxu3 %v1356_v42  ;;  %v1580_v59 = vld [vmem:[#allocation4 + $0x18c] sm:$0xf0]  ;;  %v1067_v62 = vld [vmem:[#allocation2] sm:$0xf]  ;;  %v1196_v63 = vor.u32 %v1548_v55, %v1195_v54  ;;  %v1514_v6 = vld [vmem:[#allocation2 + $0x4] sm:$0xf] }
  0x1f   :  { %200 = vmatpush.bf16.msra.mxu1 %v1104_v26  ;;  %v1324_v2 = vor.u32 %v1580_v59, %v1323_v58  ;;  %v1179_v3 = vld [vmem:[#allocation4 + $0x60] sm:$0xf]  ;;  %v1544_v4 = vld [vmem:[#allocation4 + $0x6c] sm:$0xf0]  ;;  %v1069_v9 = vld [vmem:[#allocation2 + $0x8] sm:$0xf0]  ;;  %v1068_v15 = vor.u32 %v1515_v1, %v1067_v62 }
  0x20   :  { %613 = vmatpush.bf16.msra.mxu2 %v1212_v50  ;;  %v1307_v7 = vld [vmem:[#allocation4 + $0x160] sm:$0xf]  ;;  %v1576_v8 = vld [vmem:[#allocation4 + $0x16c] sm:$0xf0]  ;;  %v1558_v10 = vld [vmem:[#allocation4 + $0xe4] sm:$0xf]  ;;  %v1180_v14 = vor.u32 %v1544_v4, %v1179_v3  ;;  %v1072_v19 = vor.u32 %v1514_v6, %v1069_v9 }
  0x21   :  { %v1245_v11 = vld [vmem:[#allocation4 + $0xf0] sm:$0xf0]  ;;  %v1590_v12 = vld [vmem:[#allocation4 + $0x1e4] sm:$0xf]  ;;  %v1308_v16 = vor.u32 %v1576_v8, %v1307_v7  ;;  %v1163_v17 = vld [vmem:[#allocation4 + $0x40] sm:$0xf] }
  0x22   :  { %187 = vmatpush.bf16.msra.mxu0 %v1092_v38  ;;  %627 = vmatpush.bf16.msra.mxu3 %v1340_v53  ;;  %v1373_v13 = vld [vmem:[#allocation4 + $0x1f0] sm:$0xf0]  ;;  %v1540_v18 = vld [vmem:[#allocation4 + $0x4c] sm:$0xf0]  ;;  %v1248_v20 = vor.u32 %v1558_v10, %v1245_v11  ;;  %v1291_v21 = vld [vmem:[#allocation4 + $0x140] sm:$0xf] }
  0x23   :  { %201 = vmatpush.bf16.msra.mxu1 %v1096_v43  ;;  %v1572_v22 = vld [vmem:[#allocation4 + $0x14c] sm:$0xf0]  ;;  %v1376_v23 = vor.u32 %v1590_v12, %v1373_v13  ;;  %v1554_v24 = vld [vmem:[#allocation4 + $0xc4] sm:$0xf]  ;;  %v1229_v25 = vld [vmem:[#allocation4 + $0xd0] sm:$0xf0]  ;;  %v1164_v29 = vor.u32 %v1540_v18, %v1163_v17 }
  0x24   :  { %614 = vmatpush.bf16.msra.mxu2 %v1196_v63  ;;  %v1513_v26 = vld [vmem:[%s1788_s0] sm:$0xff]  ;;  %v1357_v28 = vld [vmem:[#allocation4 + $0x1d0] sm:$0xf0]  ;;  %v1292_v30 = vor.u32 %v1572_v22, %v1291_v21  ;;  %v1536_v32 = vld [vmem:[#allocation4 + $0x2c] sm:$0xf0]  ;;  %v1232_v33 = vor.u32 %v1554_v24, %v1229_v25 }
  0x25   :  { %v1586_v27 = vld [vmem:[#allocation4 + $0x1c4] sm:$0xf]  ;;  %v1147_v31 = vld [vmem:[#allocation4 + $0x20] sm:$0xf]  ;;  %v1568_v35 = vld [vmem:[#allocation4 + $0x12c] sm:$0xf0] }
  0x26   :  { %188 = vmatpush.bf16.msra.mxu0 %v1084_v51  ;;  %628 = vmatpush.bf16.msra.mxu3 %v1324_v2  ;;  %v1275_v34 = vld [vmem:[#allocation4 + $0x120] sm:$0xf]  ;;  %v1360_v36 = vor.u32 %v1586_v27, %v1357_v28  ;;  %v1550_v37 = vld [vmem:[#allocation4 + $0xa4] sm:$0xf]  ;;  %v1213_v38 = vld [vmem:[#allocation4 + $0xb0] sm:$0xf0]  ;;  %v1148_v41 = vor.u32 %v1536_v32, %v1147_v31 }
  0x27   :  { %202 = vmatpush.bf16.msra.mxu1 %v1088_v56  ;;  %v1582_v39 = vld [vmem:[#allocation4 + $0x1a4] sm:$0xf]  ;;  %v1341_v40 = vld [vmem:[#allocation4 + $0x1b0] sm:$0xf0]  ;;  %v1276_v42 = vor.u32 %v1568_v35, %v1275_v34  ;;  %v1131_v43 = vld [vmem:[#allocation4] sm:$0xf]  ;;  %v1216_v45 = vor.u32 %v1550_v37, %v1213_v38 }
  0x28   :  { %615 = vmatpush.bf16.msra.mxu2 %v1180_v14  ;;  %v1532_v44 = vld [vmem:[#allocation4 + $0xc] sm:$0xf0]  ;;  %v1259_v46 = vld [vmem:[#allocation4 + $0x100] sm:$0xf]  ;;  %v1344_v48 = vor.u32 %v1582_v39, %v1341_v40  ;;  %v1546_v49 = vld [vmem:[#allocation4 + $0x84] sm:$0xf] }
  0x29   :  { %v1564_v47 = vld [vmem:[#allocation4 + $0x10c] sm:$0xf0]  ;;  %v1197_v50 = vld [vmem:[#allocation4 + $0x90] sm:$0xf0]  ;;  %v1578_v51 = vld [vmem:[#allocation4 + $0x184] sm:$0xf]  ;;  %v1132_v53 = vor.u32 %v1532_v44, %v1131_v43 }
  0x2a   :  { %189 = vmatpush.bf16.msra.mxu0 %v1076_v0  ;;  %629 = vmatpush.bf16.msra.mxu3 %v1308_v16  ;;  %v1325_v52 = vld [vmem:[#allocation4 + $0x190] sm:$0xf0]  ;;  %v1260_v54 = vor.u32 %v1564_v47, %v1259_v46  ;;  %v1200_v55 = vor.u32 %v1546_v49, %v1197_v50  ;;  %v1542_v57 = vld [vmem:[#allocation4 + $0x64] sm:$0xf]  ;;  %v1251_v17 = vld [vmem:[#allocation4 + $0xe8] sm:$0xf] }
  0x2b   :  { %203 = vmatpush.bf16.msra.mxu1 %v1080_v5  ;;  %v1328_v56 = vor.u32 %v1578_v51, %v1325_v52  ;;  %v1181_v58 = vld [vmem:[#allocation4 + $0x70] sm:$0xf0]  ;;  %v1574_v59 = vld [vmem:[#allocation4 + $0x164] sm:$0xf]  ;;  %v1561_v18 = vld [vmem:[#allocation4 + $0xf4] sm:$0xf0] }
  0x2c   :  { %616 = vmatpush.bf16.msra.mxu2 %v1164_v29  ;;  %v1309_v60 = vld [vmem:[#allocation4 + $0x170] sm:$0xf0]  ;;  %v1184_v61 = vor.u32 %v1542_v57, %v1181_v58  ;;  %v1538_v63 = vld [vmem:[#allocation4 + $0x44] sm:$0xf]  ;;  %v1593_v21 = vld [vmem:[#allocation4 + $0x1f4] sm:$0xf0] }
  0x2d   :  { %v1312_v62 = vor.u32 %v1574_v59, %v1309_v60  ;;  %v1165_v0 = vld [vmem:[#allocation4 + $0x50] sm:$0xf0]  ;;  %v1570_v1 = vld [vmem:[#allocation4 + $0x144] sm:$0xf]  ;;  %v1559_v22 = vld [vmem:[#allocation4 + $0xec] sm:$0xf] }
  0x2e   :  { %190 = vmatpush.bf16.msra.mxu0 %v1068_v15  ;;  %630 = vmatpush.bf16.msra.mxu3 %v1292_v30  ;;  %v1293_v2 = vld [vmem:[#allocation4 + $0x150] sm:$0xf0]  ;;  %v1168_v3 = vor.u32 %v1538_v63, %v1165_v0  ;;  %v1534_v5 = vld [vmem:[#allocation4 + $0x24] sm:$0xf]  ;;  %v1381_v27 = vld [vmem:[#allocation4 + $0x1f8] sm:$0xf0] }
  0x2f   :  { %204 = vmatpush.bf16.msra.mxu1 %v1072_v19  ;;  %v1296_v4 = vor.u32 %v1570_v1, %v1293_v2  ;;  %v1149_v6 = vld [vmem:[#allocation4 + $0x30] sm:$0xf0]  ;;  %v1566_v7 = vld [vmem:[#allocation4 + $0x124] sm:$0xf]  ;;  %v1379_v19 = vld [vmem:[#allocation4 + $0x1e8] sm:$0xf] }
  0x30   :  { %617 = vmatpush.bf16.msra.mxu2 %v1148_v41  ;;  %v1277_v8 = vld [vmem:[#allocation4 + $0x130] sm:$0xf0]  ;;  %v1152_v9 = vor.u32 %v1534_v5, %v1149_v6  ;;  %v1530_v11 = vld [vmem:[#allocation4 + $0x4] sm:$0xf]  ;;  %v1380_v24 = vor.u32 %v1593_v21, %v1379_v19  ;;  %v1235_v29 = vld [vmem:[#allocation4 + $0xc8] sm:$0xf] }
  0x31   :  { %191 = vmatmul.bf16.vlgmr.msra.gmra.mxu0 %v1513_v26  ;;  %v1280_v10 = vor.u32 %v1566_v7, %v1277_v8  ;;  %v1133_v12 = vld [vmem:[#allocation4 + $0x10] sm:$0xf0]  ;;  %v1562_v13 = vld [vmem:[#allocation4 + $0x104] sm:$0xf]  ;;  %v1557_v30 = vld [vmem:[#allocation4 + $0xd4] sm:$0xf0] }
  0x32   :  { %639 = vmatpush.bf16.msrb.mxu0 %v1248_v20  ;;  %205 = vmatmul.bf16.vlgmr.msra.gmra.mxu1 %v1513_v26  ;;  %v1261_v14 = vld [vmem:[#allocation4 + $0x110] sm:$0xf0]  ;;  %v1136_v15 = vor.u32 %v1530_v11, %v1133_v12  ;;  %v1252_v20 = vor.u32 %v1561_v18, %v1251_v17  ;;  %v1591_v26 = vld [vmem:[#allocation4 + $0x1ec] sm:$0xf]  ;;  %v1236_v31 = vor.u32 %v1557_v30, %v1235_v29  ;;  %v1363_v32 = vld [vmem:[#allocation4 + $0x1c8] sm:$0xf] }
  0x33   :  { %653 = vmatpush.bf16.msrb.mxu1 %v1376_v23  ;;  %631 = vmatpush.bf16.msra.mxu3 %v1276_v42  ;;  %v1264_v16 = vor.u32 %v1562_v13, %v1261_v14  ;;  %v1253_v23 = vld [vmem:[#allocation4 + $0xf8] sm:$0xf0]  ;;  %v1384_v28 = vor.u32 %v1591_v26, %v1381_v27  ;;  %v1555_v34 = vld [vmem:[#allocation4 + $0xcc] sm:$0xf]  ;;  %v1219_v41 = vld [vmem:[#allocation4 + $0xa8] sm:$0xf] }
  0x34   :  { %618 = vmatpush.bf16.msra.mxu2 %v1132_v53  ;;  %v1256_v25 = vor.u32 %v1559_v22, %v1253_v23  ;;  %v1587_v37 = vld [vmem:[#allocation4 + $0x1cc] sm:$0xf]  ;;  %v1365_v38 = vld [vmem:[#allocation4 + $0x1d8] sm:$0xf0]  ;;  %v1553_v42 = vld [vmem:[#allocation4 + $0xb4] sm:$0xf0] }
  0x35   :  { %v1368_v40 = vor.u32 %v1587_v37, %v1365_v38  ;;  %v1347_v43 = vld [vmem:[#allocation4 + $0x1a8] sm:$0xf]  ;;  %v1220_v44 = vor.u32 %v1553_v42, %v1219_v41  ;;  %v1551_v46 = vld [vmem:[#allocation4 + $0xac] sm:$0xf]  ;;  %v1221_v47 = vld [vmem:[#allocation4 + $0xb8] sm:$0xf0] }
  0x36   :  { %640 = vmatpush.bf16.msrb.mxu0 %v1232_v33  ;;  %v1589_v33 = vld [vmem:[#allocation4 + $0x1d4] sm:$0xf0]  ;;  %v1224_v49 = vor.u32 %v1551_v46, %v1221_v47  ;;  %v1583_v50 = vld [vmem:[#allocation4 + $0x1ac] sm:$0xf]  ;;  %v1349_v51 = vld [vmem:[#allocation4 + $0x1b8] sm:$0xf0] }
  0x37   :  { %654 = vmatpush.bf16.msrb.mxu1 %v1360_v36  ;;  %632 = vmatpush.bf16.msra.mxu3 %v1260_v54  ;;  %v1364_v35 = vor.u32 %v1589_v33, %v1363_v32  ;;  %v1237_v36 = vld [vmem:[#allocation4 + $0xd8] sm:$0xf0]  ;;  %v1352_v52 = vor.u32 %v1583_v50, %v1349_v51  ;;  %v1203_v53 = vld [vmem:[#allocation4 + $0x88] sm:$0xf]  ;;  %v1549_v54 = vld [vmem:[#allocation4 + $0x94] sm:$0xf0] }
  0x38   :  { %667 = vmatpush.bf16.msrb.mxu2 %v1252_v20  ;;  %v1240_v39 = vor.u32 %v1555_v34, %v1237_v36  ;;  %v1581_v57 = vld [vmem:[#allocation4 + $0x194] sm:$0xf0]  ;;  %v1547_v58 = vld [vmem:[#allocation4 + $0x8c] sm:$0xf]  ;;  %v1205_v59 = vld [vmem:[#allocation4 + $0x98] sm:$0xf0] }
  0x39   :  { %v1333_v63 = vld [vmem:[#allocation4 + $0x198] sm:$0xf0]  ;;  %v1187_v1 = vld [vmem:[#allocation4 + $0x68] sm:$0xf]  ;;  %v1545_v2 = vld [vmem:[#allocation4 + $0x74] sm:$0xf0] }
  0x3a   :  { %641 = vmatpush.bf16.msrb.mxu0 %v1216_v45  ;;  %v1585_v45 = vld [vmem:[#allocation4 + $0x1b4] sm:$0xf0]  ;;  %v1543_v6 = vld [vmem:[#allocation4 + $0x6c] sm:$0xf]  ;;  %v1189_v7 = vld [vmem:[#allocation4 + $0x78] sm:$0xf0] }
  0x3b   :  { %655 = vmatpush.bf16.msrb.mxu1 %v1344_v48  ;;  %681 = vmatpush.bf16.msrb.mxu3 %v1380_v24  ;;  %v1348_v48 = vor.u32 %v1585_v45, %v1347_v43  ;;  %v1577_v5 = vld [vmem:[#allocation4 + $0x174] sm:$0xf0]  ;;  %v1317_v11 = vld [vmem:[#allocation4 + $0x178] sm:$0xf0]  ;;  %v1171_v12 = vld [vmem:[#allocation4 + $0x48] sm:$0xf] }
  0x3c   :  { %668 = vmatpush.bf16.msrb.mxu2 %v1236_v31  ;;  %v1541_v14 = vld [vmem:[#allocation4 + $0x54] sm:$0xf0]  ;;  %v1539_v19 = vld [vmem:[#allocation4 + $0x4c] sm:$0xf]  ;;  %v1173_v20 = vld [vmem:[#allocation4 + $0x58] sm:$0xf0] }
  0x3d   :  { %v1172_v17 = vor.u32 %v1541_v14, %v1171_v12  ;;  %v1571_v21 = vld [vmem:[#allocation4 + $0x14c] sm:$0xf]  ;;  %v1176_v22 = vor.u32 %v1539_v19, %v1173_v20  ;;  %v1301_v23 = vld [vmem:[#allocation4 + $0x158] sm:$0xf0]  ;;  %v1155_v24 = vld [vmem:[#allocation4 + $0x28] sm:$0xf] }
  0x3e   :  { %642 = vmatpush.bf16.msrb.mxu0 %v1200_v55  ;;  %v1331_v55 = vld [vmem:[#allocation4 + $0x188] sm:$0xf]  ;;  %v1304_v26 = vor.u32 %v1571_v21, %v1301_v23  ;;  %v1535_v29 = vld [vmem:[#allocation4 + $0x2c] sm:$0xf]  ;;  %v1157_v31 = vld [vmem:[#allocation4 + $0x38] sm:$0xf0] }
  0x3f   :  { %656 = vmatpush.bf16.msrb.mxu1 %v1328_v56  ;;  %682 = vmatpush.bf16.msrb.mxu3 %v1364_v35  ;;  %v1204_v56 = vor.u32 %v1549_v54, %v1203_v53  ;;  %v1332_v60 = vor.u32 %v1581_v57, %v1331_v55  ;;  %v1283_v27 = vld [vmem:[#allocation4 + $0x128] sm:$0xf]  ;;  %v1567_v32 = vld [vmem:[#allocation4 + $0x12c] sm:$0xf]  ;;  %v1285_v33 = vld [vmem:[#allocation4 + $0x138] sm:$0xf0]  ;;  %v1160_v37 = vor.u32 %v1535_v29, %v1157_v31 }
  0x40   :  { %669 = vmatpush.bf16.msrb.mxu2 %v1220_v44  ;;  %v1139_v35 = vld [vmem:[#allocation4 + $0x8] sm:$0xf]  ;;  %v1533_v36 = vld [vmem:[#allocation4 + $0x14] sm:$0xf0]  ;;  %v1288_v38 = vor.u32 %v1567_v32, %v1285_v33  ;;  %v1531_v41 = vld [vmem:[#allocation4 + $0xc] sm:$0xf] }
  0x41   :  { %v1141_v42 = vld [vmem:[#allocation4 + $0x18] sm:$0xf0]  ;;  %v1563_v43 = vld [vmem:[#allocation4 + $0x10c] sm:$0xf]  ;;  %v1140_v45 = vor.u32 %v1533_v36, %v1139_v35  ;;  %v1604_v12 = vld [vmem:[#allocation6 + $0x50] sm:$0xff] }
  0x42   :  { %643 = vmatpush.bf16.msrb.mxu0 %v1184_v61  ;;  %v1208_v61 = vor.u32 %v1547_v58, %v1205_v59  ;;  %v1269_v44 = vld [vmem:[#allocation4 + $0x118] sm:$0xf0]  ;;  %v1144_v47 = vor.u32 %v1531_v41, %v1141_v42  ;;  %v1616_v19 = vld [vmem:[#allocation6 + $0xb0] sm:$0xff]  ;;  %v1602_v20 = vld [vmem:[#allocation6 + $0x40] sm:$0xff] }
  0x43   :  { %657 = vmatpush.bf16.msrb.mxu1 %v1312_v62  ;;  %683 = vmatpush.bf16.msrb.mxu3 %v1348_v48  ;;  %v1579_v62 = vld [vmem:[#allocation4 + $0x18c] sm:$0xf]  ;;  %v1272_v48 = vor.u32 %v1563_v43, %v1269_v44  ;;  %v1597_v14 = vld [vmem:[#allocation6 + $0x18] sm:$0xff]  ;;  %v1622_v21 = vld [vmem:[#allocation6 + $0xe0] sm:$0xff] }
  0x44   :  { %670 = vmatpush.bf16.msrb.mxu2 %v1204_v56  ;;  %v1336_v0 = vor.u32 %v1579_v62, %v1333_v63  ;;  %v1615_v23 = vld [vmem:[#allocation6 + $0xa8] sm:$0xff]  ;;  %v1618_v31 = vld [vmem:[#allocation6 + $0xc0] sm:$0xff] }
  0x45   :  { %v1619_v29 = vld [vmem:[#allocation6 + $0xc8] sm:$0xff]  ;;  %v281_v32 = vld [vmem:[%s1792_s4] sm:$0xf] }
  0x46   :  { %644 = vmatpush.bf16.msrb.mxu0 %v1168_v3  ;;  %v1315_v3 = vld [vmem:[#allocation4 + $0x168] sm:$0xf]  ;;  %v284_v35 = vperm.slane %v281_v32, 1 }
  0x47   :  { %658 = vmatpush.bf16.msrb.mxu1 %v1296_v4  ;;  %684 = vmatpush.bf16.msrb.mxu3 %v1332_v60  ;;  %v1188_v4 = vor.u32 %v1545_v2, %v1187_v1  ;;  %v1316_v8 = vor.u32 %v1577_v5, %v1315_v3  ;;  %v1609_v1 = vld [vmem:[#allocation6 + $0x78] sm:$0xff]  ;;  %v1600_v5 = vld [vmem:[#allocation6 + $0x30] sm:$0xff]  ;;  %v1611_v33 = vld [vmem:[#allocation6 + $0x88] sm:$0xff] }
  0x48   :  { %v1601_v2 = vld [vmem:[#allocation6 + $0x38] sm:$0xff] }
  0x49   :  { %671 = vmatpush.bf16.msrb.mxu2 %v1188_v4  ;;  %v1608_v4 = vld [vmem:[#allocation6 + $0x70] sm:$0xff] }
  0x4a   :  { %645 = vmatpush.bf16.msrb.mxu0 %v1152_v9  ;;  %v1192_v9 = vor.u32 %v1543_v6, %v1189_v7  ;;  %v1607_v6 = vld [vmem:[#allocation6 + $0x68] sm:$0xff]  ;;  %v1606_v7 = vld [vmem:[#allocation6 + $0x60] sm:$0xff] }
  0x4b   :  { %659 = vmatpush.bf16.msrb.mxu1 %v1280_v10  ;;  %v1575_v10 = vld [vmem:[#allocation4 + $0x16c] sm:$0xf]  ;;  %685 = vmatpush.bf16.msrb.mxu3 %v1316_v8 }
  0x4c   :  { %v1320_v13 = vor.u32 %v1575_v10, %v1317_v11  ;;  %v1599_v8 = vld [vmem:[#allocation6 + $0x28] sm:$0xff]  ;;  %v1625_v10 = vld [vmem:[#allocation6 + $0xf8] sm:$0xff]  ;;  %v1598_v11 = vld [vmem:[#allocation6 + $0x20] sm:$0xff] }
  0x4d   :  { %672 = vmatpush.bf16.msrb.mxu2 %v1172_v17  ;;  %v1623_v17 = vld [vmem:[#allocation6 + $0xe8] sm:$0xff] }
  0x4e   :  { %646 = vmatpush.bf16.msrb.mxu0 %v1136_v15  ;;  %v1299_v15 = vld [vmem:[#allocation4 + $0x148] sm:$0xf] }
  0x4f   :  { %660 = vmatpush.bf16.msrb.mxu1 %v1264_v16  ;;  %v1573_v16 = vld [vmem:[#allocation4 + $0x154] sm:$0xf0] }
  0x50   :  { %v1300_v18 = vor.u32 %v1573_v16, %v1299_v15  ;;  %v1617_v15 = vld [vmem:[#allocation6 + $0xb8] sm:$0xff]  ;;  %v1603_v16 = vld [vmem:[#allocation6 + $0x48] sm:$0xff] }
  0x52   :  { %695 = vmatpush.bf16.msra.mxu0 %v1256_v25  ;;  %v1537_v25 = vld [vmem:[#allocation4 + $0x34] sm:$0xf0]  ;;  %686 = vmatpush.bf16.msrb.mxu3 %v1300_v18  ;;  %v1596_v18 = vld [vmem:[#allocation6 + $0x10] sm:$0xff] }
  0x53   :  { %709 = vmatpush.bf16.msra.mxu1 %v1384_v28  ;;  %v1569_v28 = vld [vmem:[#allocation4 + $0x134] sm:$0xf0]  ;;  %v1156_v30 = vor.u32 %v1537_v25, %v1155_v24  ;;  %v1594_v25 = vld [vmem:[#allocation6] sm:$0xff] }
  0x54   :  { %v1284_v34 = vor.u32 %v1569_v28, %v1283_v27  ;;  %v1621_v24 = vld [vmem:[#allocation6 + $0xd8] sm:$0xff]  ;;  %v1620_v27 = vld [vmem:[#allocation6 + $0xd0] sm:$0xff] }
  0x55   :  { %673 = vmatpush.bf16.msrb.mxu2 %v1156_v30  ;;  %v1613_v28 = vld [vmem:[#allocation6 + $0x98] sm:$0xff]  ;;  %v1612_v30 = vld [vmem:[#allocation6 + $0x90] sm:$0xff] }
  0x56   :  { %696 = vmatpush.bf16.msra.mxu0 %v1240_v39  ;;  %v1267_v39 = vld [vmem:[#allocation4 + $0x108] sm:$0xf]  ;;  %687 = vmatpush.bf16.msrb.mxu3 %v1284_v34 }
  0x57   :  { %710 = vmatpush.bf16.msra.mxu1 %v1368_v40  ;;  %v1565_v40 = vld [vmem:[#allocation4 + $0x114] sm:$0xf0] }
  0x58   :  { %v1268_v46 = vor.u32 %v1565_v40, %v1267_v39  ;;  %v283_v40 = vperm.slane %v281_v32, 0 }
  0x59   :  { %674 = vmatpush.bf16.msrb.mxu2 %v1140_v45 }
  0x5a   :  { %697 = vmatpush.bf16.msra.mxu0 %v1224_v49  ;;  %688 = vmatpush.bf16.msrb.mxu3 %v1268_v46  ;;  %v91_v49 = vld [vmem:[%s1790_s2] sm:$0x3] }
  0x5b   :  { %711 = vmatpush.bf16.msra.mxu1 %v1352_v52  ;;  %v93_v52 = vperm.slane %v91_v49, 0  ;;  %v94_v53 = vperm.slane %v91_v49, 1 }
  0x5e   :  { %698 = vmatpush.bf16.msra.mxu0 %v1208_v61 }
  0x5f   :  { %712 = vmatpush.bf16.msra.mxu1 %v1336_v0 }
  0x62   :  { %699 = vmatpush.bf16.msra.mxu0 %v1192_v9  ;;  %v1605_v9 = vld [vmem:[#allocation6 + $0x58] sm:$0xff] }
  0x63   :  { %713 = vmatpush.bf16.msra.mxu1 %v1320_v13  ;;  %v1624_v13 = vld [vmem:[#allocation6 + $0xf0] sm:$0xff] }
  0x66   :  { %700 = vmatpush.bf16.msra.mxu0 %v1176_v22  ;;  %v1595_v22 = vld [vmem:[#allocation6 + $0x8] sm:$0xff] }
  0x67   :  { %714 = vmatpush.bf16.msra.mxu1 %v1304_v26  ;;  %v1614_v26 = vld [vmem:[#allocation6 + $0xa0] sm:$0xff] }
  0x6a   :  { %701 = vmatpush.bf16.msra.mxu0 %v1160_v37  ;;  %v1610_v37 = vld [vmem:[#allocation6 + $0x80] sm:$0xff] }
  0x6b   :  { %715 = vmatpush.bf16.msra.mxu1 %v1288_v38 }
  0x6e   :  { %702 = vmatpush.bf16.msra.mxu0 %v1144_v47 }
  0x6f   :  { %716 = vmatpush.bf16.msra.mxu1 %v1272_v48 }
  0xae   :  { %v192_v50 = vpop.f32.mrf.mxu0 }
  0xaf   :  { %v206_v51 = vpop.f32.mrf.mxu1  ;;  %v193_v54 = vadd.f32 %v192_v50, %v93_v52 }
  0xb0   :  { %v207_v55 = vadd.f32 %v206_v51, %v94_v53 }
  0xb1   :  { %v211_v60 = vmax.f32 %v193_v54, 0.0 }
  0xb2   :  { %v212_v62 = vmax.f32 %v207_v55, 0.0 }
  0xb6   :  { %v194_v56 = vpop.f32.mrf.mxu0 }
  0xb7   :  { %v195_v57 = vadd.f32 %v194_v56, %v93_v52  ;;  %v208_v58 = vpop.f32.mrf.mxu1 }
  0xb8   :  { %v209_v59 = vadd.f32 %v208_v58, %v94_v53 }
  0xb9   :  { %v213_v61 = vmax.f32 %v195_v57, 0.0  ;;  %v286_v57 = vperm.slane %v281_v32, 3 }
  0xba   :  { %v214_v63 = vmax.f32 %v209_v59, 0.0 }
  0xbb   :  { %v215_v0 = vpack.c.bf16 %v213_v61, %v211_v60 }
  0xbc   :  { %v216_v3 = vpack.c.bf16 %v214_v63, %v212_v62 }
  0xbd   :  { %619 = vmatmul.bf16.vlgmr.msra.gmra.mxu2 %v215_v0  ;;  %647 = vmatmul.bf16.vlgmr.msrb.gmra.mxu0 %v215_v0 }
  0xbe   :  { %633 = vmatmul.bf16.vlgmr.msra.gmra.mxu3 %v216_v3  ;;  %661 = vmatmul.bf16.vlgmr.msrb.gmra.mxu1 %v216_v3 }
  0xbf   :  { %1009 = vmatpush.bf16.msra.mxu3 %v1609_v1  ;;  %995 = vmatpush.bf16.msra.mxu2 %v1601_v2 }
  0xc0   :  { %1037 = vmatpush.bf16.msrb.mxu1 %v1625_v10  ;;  %1023 = vmatpush.bf16.msrb.mxu0 %v1617_v15 }
  0xc3   :  { %1010 = vmatpush.bf16.msra.mxu3 %v1608_v4  ;;  %996 = vmatpush.bf16.msra.mxu2 %v1600_v5 }
  0xc4   :  { %1038 = vmatpush.bf16.msrb.mxu1 %v1624_v13  ;;  %1024 = vmatpush.bf16.msrb.mxu0 %v1616_v19 }
  0xc7   :  { %1011 = vmatpush.bf16.msra.mxu3 %v1607_v6  ;;  %997 = vmatpush.bf16.msra.mxu2 %v1599_v8 }
  0xc8   :  { %1039 = vmatpush.bf16.msrb.mxu1 %v1623_v17  ;;  %1025 = vmatpush.bf16.msrb.mxu0 %v1615_v23 }
  0xcb   :  { %1012 = vmatpush.bf16.msra.mxu3 %v1606_v7  ;;  %998 = vmatpush.bf16.msra.mxu2 %v1598_v11 }
  0xcc   :  { %1040 = vmatpush.bf16.msrb.mxu1 %v1622_v21  ;;  %1026 = vmatpush.bf16.msrb.mxu0 %v1614_v26 }
  0xcd   :  { %675 = vmatmul.bf16.vlgmr.msrb.gmra.mxu2 %v215_v0  ;;  %703 = vmatmul.bf16.vlgmr.msra.gmra.mxu0 %v215_v0  ;;  %v285_v0 = vperm.slane %v281_v32, 2 }
  0xce   :  { %689 = vmatmul.bf16.vlgmr.msrb.gmra.mxu3 %v216_v3  ;;  %717 = vmatmul.bf16.vlgmr.msra.gmra.mxu1 %v216_v3 }
  0xcf   :  { %1013 = vmatpush.bf16.msra.mxu3 %v1605_v9  ;;  %999 = vmatpush.bf16.msra.mxu2 %v1597_v14 }
  0xd0   :  { %1041 = vmatpush.bf16.msrb.mxu1 %v1621_v24  ;;  %1027 = vmatpush.bf16.msrb.mxu0 %v1613_v28 }
  0xd3   :  { %1014 = vmatpush.bf16.msra.mxu3 %v1604_v12  ;;  %1000 = vmatpush.bf16.msra.mxu2 %v1596_v18 }
  0xd4   :  { %1042 = vmatpush.bf16.msrb.mxu1 %v1620_v27  ;;  %1028 = vmatpush.bf16.msrb.mxu0 %v1612_v30 }
  0xd7   :  { %1015 = vmatpush.bf16.msra.mxu3 %v1603_v16  ;;  %1001 = vmatpush.bf16.msra.mxu2 %v1595_v22 }
  0xd8   :  { %1043 = vmatpush.bf16.msrb.mxu1 %v1619_v29  ;;  %1029 = vmatpush.bf16.msrb.mxu0 %v1611_v33 }
  0xdb   :  { %1016 = vmatpush.bf16.msra.mxu3 %v1602_v20  ;;  %1002 = vmatpush.bf16.msra.mxu2 %v1594_v25  ;;  %v1635_v20 = vld [vmem:[%s1794_s6] ss:$0 sm:$0xff] }
  0xdc   :  { %1044 = vmatpush.bf16.msrb.mxu1 %v1618_v31  ;;  %1030 = vmatpush.bf16.msrb.mxu0 %v1610_v37 }
 0x13a   :  { %v648_v34 = vpop.f32.mrf.mxu0 }
 0x13b   :  { %v662_v36 = vpop.f32.mrf.mxu1  ;;  %v649_v38 = vadd.f32 %v648_v34, %v284_v35 }
 0x13d   :  { %v663_v43 = vadd.f32 %v662_v36, %v649_v38 }
 0x13f   :  { %v724_v48 = vmax.f32 %v663_v43, 0.0 }
 0x140   :  { %v620_v39 = vpop.f32.mrf.mxu2 }
 0x141   :  { %v634_v41 = vpop.f32.mrf.mxu3  ;;  %v621_v46 = vadd.f32 %v620_v39, %v283_v40 }
 0x142   :  { %v650_v42 = vpop.f32.mrf.mxu0 }
 0x143   :  { %v651_v44 = vadd.f32 %v650_v42, %v284_v35  ;;  %v664_v45 = vpop.f32.mrf.mxu1  ;;  %v635_v51 = vadd.f32 %v634_v41, %v621_v46 }
 0x145   :  { %v665_v47 = vadd.f32 %v664_v45, %v651_v44  ;;  %v723_v59 = vmax.f32 %v635_v51, 0.0 }
 0x147   :  { %v728_v49 = vmax.f32 %v665_v47, 0.0 }
 0x148   :  { %v622_v50 = vpop.f32.mrf.mxu2 }
 0x149   :  { %v732_v52 = vpack.c.bf16 %v728_v49, %v724_v48  ;;  %v623_v53 = vadd.f32 %v622_v50, %v283_v40  ;;  %v636_v54 = vpop.f32.mrf.mxu3 }
 0x14a   :  { %v704_v55 = vpop.f32.mrf.mxu0 }
 0x14b   :  { %v637_v56 = vadd.f32 %v636_v54, %v623_v53  ;;  %v718_v58 = vpop.f32.mrf.mxu1  ;;  %1017 = vmatmul.bf16.vlgmr.msra.gmra.mxu3 %v732_v52  ;;  %v705_v62 = vadd.f32 %v704_v55, %v286_v57 }
 0x14d   :  { %v727_v60 = vmax.f32 %v637_v56, 0.0  ;;  %v719_v3 = vadd.f32 %v718_v58, %v705_v62 }
 0x14f   :  { %v731_v61 = vpack.c.bf16 %v727_v60, %v723_v59  ;;  %v726_v8 = vmax.f32 %v719_v3, 0.0 }
 0x150   :  { %v676_v63 = vpop.f32.mrf.mxu2 }
 0x151   :  { %v690_v1 = vpop.f32.mrf.mxu3  ;;  %1003 = vmatmul.bf16.vlgmr.msra.gmra.mxu2 %v731_v61  ;;  %v677_v6 = vadd.f32 %v676_v63, %v285_v0 }
 0x152   :  { %v706_v2 = vpop.f32.mrf.mxu0 }
 0x153   :  { %v707_v4 = vadd.f32 %v706_v2, %v286_v57  ;;  %v720_v5 = vpop.f32.mrf.mxu1  ;;  %v691_v11 = vadd.f32 %v690_v1, %v677_v6 }
 0x155   :  { %v721_v7 = vadd.f32 %v720_v5, %v707_v4  ;;  %v725_v16 = vmax.f32 %v691_v11, 0.0 }
 0x157   :  { %v730_v9 = vmax.f32 %v721_v7, 0.0 }
 0x158   :  { %v678_v10 = vpop.f32.mrf.mxu2 }
 0x159   :  { %v734_v12 = vpack.c.bf16 %v730_v9, %v726_v8  ;;  %v679_v13 = vadd.f32 %v678_v10, %v285_v0  ;;  %v692_v14 = vpop.f32.mrf.mxu3 }
 0x15b   :  { %v693_v15 = vadd.f32 %v692_v14, %v679_v13  ;;  %1045 = vmatmul.bf16.vlgmr.msrb.gmra.mxu1 %v734_v12 }
 0x15d   :  { %v729_v17 = vmax.f32 %v693_v15, 0.0 }
 0x15f   :  { %v733_v18 = vpack.c.bf16 %v729_v17, %v725_v16 }
 0x161   :  { %1031 = vmatmul.bf16.vlgmr.msrb.gmra.mxu0 %v733_v18 }
 0x1ce   :  { %v1018_v22 = vpop.f32.mrf.mxu3 }
 0x1d4   :  { %v1004_v19 = vpop.f32.mrf.mxu2 }
 0x1d5   :  { %v1005_v21 = vadd.f32 %v1635_v20, %v1004_v19 }
 0x1d6   :  { %v1020_v31 = vpop.f32.mrf.mxu3 }
 0x1d7   :  { %v1019_v24 = vadd.f32 %v1018_v22, %v1005_v21 }
 0x1d8   :  { %v1046_v23 = vpop.f32.mrf.mxu1 }
 0x1dc   :  { %v1006_v25 = vpop.f32.mrf.mxu2 }
 0x1dd   :  { %v1007_v28 = vadd.f32 %v1635_v20, %v1006_v25 }
 0x1de   :  { %v1032_v26 = vpop.f32.mrf.mxu0 }
 0x1df   :  { %v1033_v27 = vadd.f32 %v1032_v26, %v1019_v24  ;;  %v1021_v32 = vadd.f32 %v1020_v31, %v1007_v28 }
 0x1e0   :  { %v1048_v35 = vpop.f32.mrf.mxu1 }
 0x1e1   :  { %v1047_v29 = vadd.f32 %v1046_v23, %v1033_v27 }
 0x1e3   :  { %v1051_v30 = vmax.f32 %v1047_v29, 0.0 }
 0x1e5   :  { %1053 = vst [vmem:[%s1795_s7] sm:$0xff] %v1051_v30 }
 0x1e6   :  { %v1034_v33 = vpop.f32.mrf.mxu0 }
 0x1e7   :  { %v1035_v34 = vadd.f32 %v1034_v33, %v1021_v32 }
 0x1e9   :  { %v1049_v36 = vadd.f32 %v1048_v35, %v1035_v34 }
 0x1eb   :  { %v1052_v37 = vmax.f32 %v1049_v36, 0.0 }
 0x1ed   :  { %1054 = vst [vmem:[%s1795_s7 + $0x8] sm:$0xff] %v1052_v37 }
 0x1ee   :  { %1059 = vsyncpa [#allocation3], 1 }
 0x1ef   :  { %1060 = vsyncpa [#allocation5], 1 }

</bundles_post_ra>
